<compile_context>
chip_gen: v5e
topology: v5e:2x2
jax: 0.10.0
libtpu: 0.0.40
codegen_flags: <defaults>
</compile_context>

<pallas_src>
import functools
import math

import jax
import jax.numpy as jnp
from jax import lax
from jax.experimental import pallas as pl
from jax.experimental.pallas import tpu as pltpu

_MASK_VALUE = -1e30


def _default_vmem_limit():
    try:
        cap = int(pltpu.get_tpu_info().vmem_capacity_bytes)
    except Exception:
        cap = 64 * 1024 * 1024
    # Leave headroom for compiler scratch / double buffers (esp. v7x 64MiB).
    return min(int(cap * 3 // 4), 100 * 1024 * 1024)


_VMEM_LIMIT = _default_vmem_limit()


def _round_up(x, m):
    return ((x + m - 1) // m) * m


def _itemsize(x):
    return jnp.dtype(x.dtype).itemsize


def _pick_tile(total, preferred):
    """Largest multiple of 128 <= preferred that divides total (total%128==0)."""
    preferred = max(128, min(preferred, total))
    best = 128
    t = 128
    while t <= preferred:
        if total % t == 0:
            best = t
        t += 128
    return best


# ---------------------------------------------------------------------------
# Linear with optional fused RMSNorm prologue and optional bias.
# Grid = (N_tiles, M_tiles): N outermost so each weight slab is loaded once.
# ---------------------------------------------------------------------------
def _linear_kernel(eps, has_norm, has_bias, *refs):
    idx = 0
    x_ref = refs[idx]; idx += 1
    nw_ref = None
    if has_norm:
        nw_ref = refs[idx]; idx += 1
    w_ref = refs[idx]; idx += 1
    b_ref = None
    if has_bias:
        b_ref = refs[idx]; idx += 1
    o_ref = refs[idx]

    if has_norm:
        x = x_ref[...].astype(jnp.float32)
        var = jnp.mean(x * x, axis=-1, keepdims=True)
        xn = (x * lax.rsqrt(var + eps) *
              nw_ref[...].astype(jnp.float32)).astype(w_ref.dtype)
    else:
        xn = x_ref[...]
    acc = jnp.dot(xn, w_ref[...], preferred_element_type=jnp.float32)
    if has_bias:
        acc = acc + b_ref[...].astype(jnp.float32)
    o_ref[...] = acc.astype(o_ref.dtype)


def linear(x, w, b=None, norm_weight=None, *, eps=1e-6, block_m, block_n=1024):
    seq, k_dim = x.shape
    _, n = w.shape
    assert seq % block_m == 0
    n_pad = _round_up(n, 128)
    if n_pad != n:
        w = jnp.pad(w, ((0, 0), (0, n_pad - n)))
        if b is not None:
            b = jnp.pad(b, (0, n_pad - n))
    tn = _pick_tile(n_pad, block_n)
    n_tiles = n_pad // tn
    grid = (n_tiles, seq // block_m)  # N outermost -> weight slab loaded once

    in_specs = [pl.BlockSpec((block_m, k_dim), lambda nb, mb: (mb, 0))]
    args = [x]
    if norm_weight is not None:
        in_specs.append(pl.BlockSpec((1, k_dim), lambda nb, mb: (0, 0)))
        args.append(norm_weight.reshape(1, k_dim))
    in_specs.append(pl.BlockSpec((k_dim, tn), lambda nb, mb: (0, nb)))
    args.append(w)
    if b is not None:
        in_specs.append(pl.BlockSpec((1, tn), lambda nb, mb: (0, nb)))
        args.append(b.reshape(1, n_pad))
    o_spec = pl.BlockSpec((block_m, tn), lambda nb, mb: (mb, nb))

    flops = 2 * seq * k_dim * n_pad
    bytes_accessed = int(w.nbytes                      # weights: read once
                         + x.nbytes * n_tiles          # acts: re-read per N tile
                         + seq * n_pad * _itemsize(x))  # output: written once

    out = pl.pallas_call(
        functools.partial(_linear_kernel, eps,
                          norm_weight is not None, b is not None),
        out_shape=jax.ShapeDtypeStruct((seq, n_pad), x.dtype),
        grid_spec=pltpu.PrefetchScalarGridSpec(
            num_scalar_prefetch=0, grid=grid,
            in_specs=in_specs, out_specs=o_spec),
        compiler_params=pltpu.CompilerParams(
            dimension_semantics=("parallel", "parallel"),
            vmem_limit_bytes=_VMEM_LIMIT),
        cost_estimate=pl.CostEstimate(flops=flops, transcendentals=0,
                                      bytes_accessed=bytes_accessed),
    )(*args)
    return out[:, :n] if n_pad != n else out


# ---------------------------------------------------------------------------
# Causal GQA flash attention with in-kernel RoPE.
# q/k/v are read directly from the fused qkv projection [S, (nq+2*nkv)*hd]
# via column-block index maps; output is [S, nq*hd] (lane-dense stores).
# ---------------------------------------------------------------------------
def _attn_kernel(scale, block_q, block_kv, hd,
                 q_ref, k_ref, v_ref, cq_ref, sq_ref, ck_ref, sk_ref,
                 o_ref, m_ref, l_ref, acc_ref):
    i = pl.program_id(0)
    j = pl.program_id(2)

    @pl.when(j == 0)
    def _():
        m_ref[...] = jnp.full_like(m_ref, _MASK_VALUE)
        l_ref[...] = jnp.zeros_like(l_ref)
        acc_ref[...] = jnp.zeros_like(acc_ref)

    # Skip kv blocks entirely above the causal diagonal (DMA is suppressed by
    # the clamped index_map; compute is suppressed here).
    @pl.when(j * block_kv <= i * block_q + (block_q - 1))
    def _():
        lane = lax.broadcasted_iota(jnp.int32, (1, hd), 1)
        sign = jnp.where(lane < hd // 2, -1.0, 1.0)

        def rope(x_ref_, cos_ref_, sin_ref_):
            xf = x_ref_[...].astype(jnp.float32)
            c = cos_ref_[...].astype(jnp.float32)
            s = sin_ref_[...].astype(jnp.float32)
            # rotate_half via XLU roll (+/- sign), frees VALU/store slots.
            rot = pltpu.roll(xf, shift=hd // 2, axis=1) * sign
            return xf * c + rot * s

        v = v_ref[...]
        q = rope(q_ref, cq_ref, sq_ref).astype(v.dtype)   # (block_q, hd)
        k = rope(k_ref, ck_ref, sk_ref).astype(v.dtype)   # (block_kv, hd)

        s = lax.dot_general(q, k, (((1,), (1,)), ((), ())),
                            preferred_element_type=jnp.float32) * scale
        rows = i * block_q + lax.broadcasted_iota(jnp.int32,
                                                  (block_q, block_kv), 0)
        cols = j * block_kv + lax.broadcasted_iota(jnp.int32,
                                                   (block_q, block_kv), 1)
        s = jnp.where(cols <= rows, s, _MASK_VALUE)

        m_prev = m_ref[...]
        m_new = jnp.maximum(m_prev, s.max(axis=-1, keepdims=True))
        alpha = jnp.exp(m_prev - m_new)
        p = jnp.exp(s - m_new)
        l_ref[...] = alpha * l_ref[...] + p.sum(axis=-1, keepdims=True)
        acc_ref[...] = alpha * acc_ref[...] + jnp.dot(
            p.astype(v.dtype), v, preferred_element_type=jnp.float32)
        m_ref[...] = m_new

    @pl.when(j == pl.num_programs(2) - 1)
    def _():
        o_ref[...] = (acc_ref[...] *
                      pl.reciprocal(l_ref[...], approx=True)).astype(o_ref.dtype)


def causal_attention(qkv, cos, sin, *, num_heads, num_kv_heads, head_dim,
                     block_q, block_kv):
    """qkv: [S, (nq+2*nkv)*hd]; cos/sin: [S, hd]  ->  [S, nq*hd] (causal GQA)."""
    s_pad, qkv_dim = qkv.shape
    nq, nkv, hd = num_heads, num_kv_heads, head_dim
    group = nq // nkv
    assert qkv_dim == (nq + 2 * nkv) * hd
    assert s_pad % block_q == 0 and s_pad % block_kv == 0
    scale = 1.0 / math.sqrt(hd)
    grid = (s_pad // block_q, nq, s_pad // block_kv)

    def kv_last(i):
        return (i * block_q + block_q - 1) // block_kv

    def q_map(i, h, j):
        return (i, h)

    def k_map(i, h, j):
        return (jnp.minimum(j, kv_last(i)), nq + h // group)

    def v_map(i, h, j):
        return (jnp.minimum(j, kv_last(i)), nq + nkv + h // group)

    def cs_q_map(i, h, j):
        return (i, 0)

    def cs_k_map(i, h, j):
        return (jnp.minimum(j, kv_last(i)), 0)

    isz = _itemsize(qkv)
    flops = int(2 * nq * s_pad * s_pad * hd)          # ~causal half of 4*S^2
    kv_bytes = int(2 * nq * (s_pad // block_q) * (s_pad // 2) * hd * isz)
    bytes_accessed = int(2 * s_pad * nq * hd * isz + kv_bytes)

    out = pl.pallas_call(
        functools.partial(_attn_kernel, scale, block_q, block_kv, hd),
        out_shape=jax.ShapeDtypeStruct((s_pad, nq * hd), qkv.dtype),
        grid_spec=pltpu.PrefetchScalarGridSpec(
            num_scalar_prefetch=0,
            grid=grid,
            in_specs=[
                pl.BlockSpec((block_q, hd), q_map),
                pl.BlockSpec((block_kv, hd), k_map),
                pl.BlockSpec((block_kv, hd), v_map),
                pl.BlockSpec((block_q, hd), cs_q_map),
                pl.BlockSpec((block_q, hd), cs_q_map),
                pl.BlockSpec((block_kv, hd), cs_k_map),
                pl.BlockSpec((block_kv, hd), cs_k_map),
            ],
            out_specs=pl.BlockSpec((block_q, hd), q_map),
            scratch_shapes=[
                pltpu.VMEM((block_q, 1), jnp.float32),
                pltpu.VMEM((block_q, 1), jnp.float32),
                pltpu.VMEM((block_q, hd), jnp.float32),
            ],
        ),
        compiler_params=pltpu.CompilerParams(
            dimension_semantics=("parallel", "parallel", "arbitrary"),
            vmem_limit_bytes=_VMEM_LIMIT),
        cost_estimate=pl.CostEstimate(flops=flops,
                                      transcendentals=int(nq * s_pad * s_pad // 2),
                                      bytes_accessed=bytes_accessed),
    )(qkv, qkv, qkv, cos, sin, cos, sin)
    return out


# ---------------------------------------------------------------------------
# Fused (attn_out + residual) + RMSNorm + Qwen2 MLP.
# Grid = (M_tiles, K_tiles), K (intermediate dim) innermost with an f32
# accumulator; residual emitted as a second output (written at kk == 0,
# resident in VMEM until the M block changes).
# ---------------------------------------------------------------------------
def _mlp_kernel(eps, x_ref, r_ref, nw_ref, wg_ref, wu_ref, wd_ref,
                o_ref, res_ref, acc_ref, xn_ref):
    kk = pl.program_id(1)

    @pl.when(kk == 0)
    def _():
        xr = x_ref[...].astype(jnp.float32) + r_ref[...].astype(jnp.float32)
        res_ref[...] = xr.astype(res_ref.dtype)
        var = jnp.mean(xr * xr, axis=-1, keepdims=True)
        xn_ref[...] = (xr * lax.rsqrt(var + eps) *
                       nw_ref[...].astype(jnp.float32)).astype(xn_ref.dtype)
        acc_ref[...] = jnp.zeros_like(acc_ref)

    xn = xn_ref[...]
    gate = jnp.dot(xn, wg_ref[...], preferred_element_type=jnp.float32)
    up = jnp.dot(xn, wu_ref[...], preferred_element_type=jnp.float32)
    act = gate * lax.logistic(gate) * up          # SiLU(gate) * up, in f32
    acc_ref[...] += jnp.dot(act.astype(wd_ref.dtype), wd_ref[...],
                            preferred_element_type=jnp.float32)

    @pl.when(kk == pl.num_programs(1) - 1)
    def _():
        o_ref[...] = acc_ref[...].astype(o_ref.dtype)


def qwen2_mlp(attn_out, residual, norm_weight, w_gate, w_up, w_down, *,
              eps=1e-6, block_m, block_k=512):
    seq, hidden = attn_out.shape
    inter = w_gate.shape[1]
    assert seq % block_m == 0
    inter_pad = _round_up(inter, 128)
    if inter_pad != inter:
        w_gate = jnp.pad(w_gate, ((0, 0), (0, inter_pad - inter)))
        w_up = jnp.pad(w_up, ((0, 0), (0, inter_pad - inter)))
        w_down = jnp.pad(w_down, ((0, inter_pad - inter), (0, 0)))
    tk = _pick_tile(inter_pad, block_k)
    m_tiles = seq // block_m
    grid = (m_tiles, inter_pad // tk)

    flops = 6 * seq * hidden * inter_pad
    weight_bytes = w_gate.nbytes + w_up.nbytes + w_down.nbytes
    bytes_accessed = int(weight_bytes * m_tiles            # weights per M tile
                         + 2 * attn_out.nbytes             # x + residual read once
                         + 2 * seq * hidden * _itemsize(attn_out))  # two outputs

    out, new_res = pl.pallas_call(
        functools.partial(_mlp_kernel, eps),
        out_shape=(jax.ShapeDtypeStruct((seq, hidden), attn_out.dtype),
                   jax.ShapeDtypeStruct((seq, hidden), attn_out.dtype)),
        grid_spec=pltpu.PrefetchScalarGridSpec(
            num_scalar_prefetch=0,
            grid=grid,
            in_specs=[
                pl.BlockSpec((block_m, hidden), lambda i, kk: (i, 0)),
                pl.BlockSpec((block_m, hidden), lambda i, kk: (i, 0)),
                pl.BlockSpec((1, hidden), lambda i, kk: (0, 0)),
                pl.BlockSpec((hidden, tk), lambda i, kk: (0, kk)),
                pl.BlockSpec((hidden, tk), lambda i, kk: (0, kk)),
                pl.BlockSpec((tk, hidden), lambda i, kk: (kk, 0)),
            ],
            out_specs=[pl.BlockSpec((block_m, hidden), lambda i, kk: (i, 0)),
                       pl.BlockSpec((block_m, hidden), lambda i, kk: (i, 0))],
            scratch_shapes=[pltpu.VMEM((block_m, hidden), jnp.float32),
                            pltpu.VMEM((block_m, hidden), attn_out.dtype)],
        ),
        compiler_params=pltpu.CompilerParams(
            dimension_semantics=("parallel", "arbitrary"),
            vmem_limit_bytes=_VMEM_LIMIT),
        cost_estimate=pl.CostEstimate(flops=flops,
                                      transcendentals=seq * inter_pad,
                                      bytes_accessed=bytes_accessed),
    )(attn_out, residual, norm_weight.reshape(1, hidden), w_gate, w_up, w_down)
    return out, new_res


# ---------------------------------------------------------------------------
# Decoder layer wrapper
# ---------------------------------------------------------------------------
def qwen2_decoder_layer(hidden_states, rotary_pos_emb, params, *,
                        num_heads, num_kv_heads, head_dim,
                        residual=None, rms_eps=1e-6,
                        block_m=256, block_n=1024, block_k=512):
    cos, sin = rotary_pos_emb
    seq, hidden = hidden_states.shape
    assert num_heads % num_kv_heads == 0

    # Token tile: multiple of 16 rows (bf16 sublane packing), clamped to seq.
    tm = min(block_m, _round_up(seq, 16))
    s_pad = _round_up(seq, tm)

    def pad_rows(a):
        if a.shape[0] == s_pad:
            return a
        pad = [(0, s_pad - a.shape[0])] + [(0, 0)] * (a.ndim - 1)
        return jnp.pad(a, pad)

    x = pad_rows(hidden_states)
    cos_p = pad_rows(cos)
    sin_p = pad_rows(sin)

    # Residual stream.  input_layernorm itself is fused into the QKV kernel.
    if residual is None:
        res1 = x
    else:
        res1 = (x.astype(jnp.float32) +
                pad_rows(residual).astype(jnp.float32)).astype(x.dtype)

    # --- self attention (RMSNorm fused into QKV proj, RoPE fused in attn) ---
    qkv = linear(res1, params["w_qkv"], params["b_qkv"],
                 norm_weight=params["input_layernorm"], eps=rms_eps,
                 block_m=tm, block_n=block_n)
    attn = causal_attention(qkv, cos_p, sin_p,
                            num_heads=num_heads, num_kv_heads=num_kv_heads,
                            head_dim=head_dim, block_q=tm, block_kv=tm)
    attn_out = linear(attn, params["w_o"], None, block_m=tm, block_n=block_n)

    # --- post_attention_layernorm + MLP fused (emits the new residual) ---
    mlp_out, res2 = qwen2_mlp(attn_out, res1,
                              params["post_attention_layernorm"],
                              params["w_gate"], params["w_up"],
                              params["w_down"],
                              eps=rms_eps, block_m=tm, block_k=block_k)

    return mlp_out[:seq], res2[:seq]


# ---------------------------------------------------------------------------
# Pure-JAX f32 reference
# ---------------------------------------------------------------------------
def _rms_ref(x, w, eps):
    var = jnp.mean(x * x, axis=-1, keepdims=True)
    return x * lax.rsqrt(var + eps) * w


def _rotate_half_ref(x):
    half = x.shape[-1] // 2
    return jnp.concatenate([-x[..., half:], x[..., :half]], axis=-1)


def _ref_decoder_layer(hidden_states, residual, cos, sin, params, *,
                       num_heads, num_kv_heads, head_dim, rms_eps=1e-6):
    f32 = jnp.float32
    x = hidden_states.astype(f32)
    res = x if residual is None else x + residual.astype(f32)
    h = _rms_ref(res, params["input_layernorm"].astype(f32), rms_eps)

    qkv = h @ params["w_qkv"].astype(f32) + params["b_qkv"].astype(f32)
    seq = x.shape[0]
    q_sz = num_heads * head_dim
    kv_sz = num_kv_heads * head_dim
    q = qkv[:, :q_sz].reshape(seq, num_heads, head_dim)
    k = qkv[:, q_sz:q_sz + kv_sz].reshape(seq, num_kv_heads, head_dim)
    v = qkv[:, q_sz + kv_sz:].reshape(seq, num_kv_heads, head_dim)
    c = cos.astype(f32)[:, None, :]
    s = sin.astype(f32)[:, None, :]
    q = q * c + _rotate_half_ref(q) * s
    k = k * c + _rotate_half_ref(k) * s

    group = num_heads // num_kv_heads
    k_rep = jnp.repeat(k, group, axis=1)
    v_rep = jnp.repeat(v, group, axis=1)
    scores = jnp.einsum("qhd,khd->hqk", q, k_rep) / math.sqrt(head_dim)
    mask = jnp.tril(jnp.ones((seq, seq), dtype=bool))
    scores = jnp.where(mask[None], scores, -jnp.inf)
    probs = jax.nn.softmax(scores, axis=-1)
    attn = jnp.einsum("hqk,khd->qhd", probs, v_rep).reshape(seq, q_sz)
    attn_out = attn @ params["w_o"].astype(f32)

    res2 = attn_out + res
    h2 = _rms_ref(res2, params["post_attention_layernorm"].astype(f32), rms_eps)

    gate = h2 @ params["w_gate"].astype(f32)
    up = h2 @ params["w_up"].astype(f32)
    act = gate * jax.nn.sigmoid(gate) * up
    out = act @ params["w_down"].astype(f32)
    return out, res2


if __name__ == "__main__":
    hidden_size = 256
    num_heads = 2
    num_kv_heads = 1
    head_dim = 128
    intermediate_size = 512
    seq = 12                       # deliberately not a multiple of the tile
    rms_eps = 1e-6
    rope_theta = 10000.0
    dtype = jnp.bfloat16

    key = jax.random.PRNGKey(0)
    ks = jax.random.split(key, 10)

    def wmat(k, shape, scale):
        return (jax.random.normal(k, shape, jnp.float32) * scale).astype(dtype)

    qkv_out = (num_heads + 2 * num_kv_heads) * head_dim
    params = {
        "input_layernorm":
            (1.0 + 0.1 * jax.random.normal(ks[0], (hidden_size,),
                                           jnp.float32)).astype(dtype),
        "post_attention_layernorm":
            (1.0 + 0.1 * jax.random.normal(ks[1], (hidden_size,),
                                           jnp.float32)).astype(dtype),
        "w_qkv": wmat(ks[2], (hidden_size, qkv_out), hidden_size ** -0.5),
        "b_qkv": wmat(ks[3], (qkv_out,), 0.02),
        "w_o": wmat(ks[4], (num_heads * head_dim, hidden_size),
                    (num_heads * head_dim) ** -0.5),
        "w_gate": wmat(ks[5], (hidden_size, intermediate_size),
                       hidden_size ** -0.5),
        "w_up": wmat(ks[6], (hidden_size, intermediate_size),
                     hidden_size ** -0.5),
        "w_down": wmat(ks[7], (intermediate_size, hidden_size),
                       intermediate_size ** -0.5),
    }
    x = wmat(ks[8], (seq, hidden_size), 1.0)

    # rotary embedding tables (seq, head_dim), f32
    pos = jnp.arange(seq, dtype=jnp.float32)
    inv_freq = 1.0 / (rope_theta ** (jnp.arange(0, head_dim, 2,
                                                dtype=jnp.float32) / head_dim))
    freqs = pos[:, None] * inv_freq[None, :]
    emb = jnp.concatenate([freqs, freqs], axis=-1)
    cos, sin = jnp.cos(emb), jnp.sin(emb)

    layer = functools.partial(qwen2_decoder_layer,
                              num_heads=num_heads, num_kv_heads=num_kv_heads,
                              head_dim=head_dim, rms_eps=rms_eps)
    ref_layer = functools.partial(_ref_decoder_layer,
                                  num_heads=num_heads,
                                  num_kv_heads=num_kv_heads,
                                  head_dim=head_dim, rms_eps=rms_eps)

    # First layer call: residual is None (first decoder layer).
    out1, res1 = layer(x, (cos, sin), params, residual=None)
    out1, res1 = jax.block_until_ready((out1, res1))
    ref_out1, ref_res1 = ref_layer(x, None, cos, sin, params)

    # Second call: residual path (subsequent layers).  Feed the kernel outputs
    # to both implementations so per-call error does not compound.
    out2, res2 = layer(out1, (cos, sin), params, residual=res1)
    out2, res2 = jax.block_until_ready((out2, res2))
    ref_out2, ref_res2 = ref_layer(out1, res1, cos, sin, params)

    def close(a, b, atol=6e-2, rtol=6e-2):
        return jnp.allclose(a.astype(jnp.float32), b.astype(jnp.float32),
                            atol=atol, rtol=rtol)

    assert out1.shape == (seq, hidden_size) and res1.shape == (seq, hidden_size)
    assert close(out1, ref_out1), "layer-1 hidden_states mismatch vs reference"
    assert close(res1, ref_res1), "layer-1 residual mismatch vs reference"
    assert close(out2, ref_out2), "layer-2 hidden_states mismatch vs reference"
    assert close(res2, ref_res2), "layer-2 residual mismatch vs reference"

    print("KERNEL_OK")
</pallas_src>

<mosaic_0001>
module attributes {stable_mosaic.version = 11 : i64} {
  func.func @_linear_kernel(%arg0: i32, %arg1: i32, %arg2: memref<16x256xbf16, #tpu.memory_space<vmem>>, %arg3: memref<1x256xbf16, #tpu.memory_space<vmem>>, %arg4: memref<256x512xbf16, #tpu.memory_space<vmem>>, %arg5: memref<1x512xbf16, #tpu.memory_space<vmem>>, %arg6: memref<16x512xbf16, #tpu.memory_space<vmem>>) attributes {dimension_semantics = [#tpu.dimension_semantics<parallel>, #tpu.dimension_semantics<parallel>], iteration_bounds = array<i64: 1, 1>, scalar_prefetch = 0 : i64, scratch_operands = 0 : i64, tpu.core_type = #tpu.core_type<tc>, window_params = [{transform_indices = @transform_0, window_bounds = array<i64: 16, 256>}, {pipeline_mode = #tpu.pipeline_mode<synchronous>, transform_indices = @transform_1, window_bounds = array<i64: 1, 256>}, {transform_indices = @transform_2, window_bounds = array<i64: 256, 512>}, {transform_indices = @transform_3, window_bounds = array<i64: 1, 512>}, {transform_indices = @transform_4, window_bounds = array<i64: 16, 512>}]} {
    %c0 = arith.constant 0 : index
    %c0_0 = arith.constant 0 : index
    %0 = vector.load %arg2[%c0, %c0_0] : memref<16x256xbf16, #tpu.memory_space<vmem>>, vector<16x256xbf16>
    %1 = arith.extf %0 : vector<16x256xbf16> to vector<16x256xf32>
    %2 = arith.mulf %1, %1 : vector<16x256xf32>
    %cst = arith.constant dense<0.000000e+00> : vector<16xf32>
    %3 = vector.multi_reduction <add>, %2, %cst [1] : vector<16x256xf32> to vector<16xf32>
    %4 = vector.shape_cast %3 : vector<16xf32> to vector<16x1xf32>
    %cst_1 = arith.constant 2.560000e+02 : f32
    %5 = vector.broadcast %cst_1 : f32 to vector<16x1xf32>
    %6 = arith.divf %4, %5 : vector<16x1xf32>
    %cst_2 = arith.constant 9.99999997E-7 : f32
    %7 = vector.broadcast %cst_2 : f32 to vector<16x1xf32>
    %8 = arith.addf %6, %7 : vector<16x1xf32>
    %9 = math.rsqrt %8 : vector<16x1xf32>
    %10 = vector.broadcast %9 : vector<16x1xf32> to vector<16x256xf32>
    %11 = arith.mulf %1, %10 : vector<16x256xf32>
    %c0_3 = arith.constant 0 : index
    %c0_4 = arith.constant 0 : index
    %12 = vector.load %arg3[%c0_3, %c0_4] : memref<1x256xbf16, #tpu.memory_space<vmem>>, vector<1x256xbf16>
    %13 = arith.extf %12 : vector<1x256xbf16> to vector<1x256xf32>
    %14 = vector.broadcast %13 : vector<1x256xf32> to vector<16x256xf32>
    %15 = arith.mulf %11, %14 : vector<16x256xf32>
    %16 = arith.truncf %15 : vector<16x256xf32> to vector<16x256xbf16>
    %c0_5 = arith.constant 0 : index
    %c0_6 = arith.constant 0 : index
    %17 = vector.load %arg4[%c0_5, %c0_6] : memref<256x512xbf16, #tpu.memory_space<vmem>>, vector<256x512xbf16>
    %cst_7 = arith.constant dense<0.000000e+00> : vector<16x512xf32>
    %18 = tpu.matmul %16, %17, %cst_7 {dimension_numbers = #tpu.dot_dimension_numbers<[1], [0], [0], [1], [0, 0, 1, 1], [], []>} : vector<16x256xbf16>, vector<256x512xbf16>, vector<16x512xf32> -> vector<16x512xf32>
    %c0_8 = arith.constant 0 : index
    %c0_9 = arith.constant 0 : index
    %19 = vector.load %arg5[%c0_8, %c0_9] : memref<1x512xbf16, #tpu.memory_space<vmem>>, vector<1x512xbf16>
    %20 = arith.extf %19 : vector<1x512xbf16> to vector<1x512xf32>
    %21 = vector.broadcast %20 : vector<1x512xf32> to vector<16x512xf32>
    %22 = arith.addf %18, %21 : vector<16x512xf32>
    %23 = arith.truncf %22 : vector<16x512xf32> to vector<16x512xbf16>
    %c0_10 = arith.constant 0 : index
    %c0_11 = arith.constant 0 : index
    %24 = vector.load %arg6[%c0_10, %c0_11] : memref<16x512xbf16, #tpu.memory_space<vmem>>, vector<16x512xbf16>
    tpu.vector_store %arg6[%c0_10, %c0_11], %23 {strides = array<i32>} : memref<16x512xbf16, #tpu.memory_space<vmem>>, vector<16x512xbf16>,
    return
  }
  func.func @transform_0(%arg0: i32, %arg1: i32) -> (i32, i32) {
    %c0_i32 = arith.constant 0 : i32
    %c0_i32_0 = arith.constant 0 : i32
    return %arg1, %c0_i32 : i32, i32
  }
  func.func @transform_1(%arg0: i32, %arg1: i32) -> (i32, i32) {
    %c0_i32 = arith.constant 0 : i32
    %c0_i32_0 = arith.constant 0 : i32
    %c0_i32_1 = arith.constant 0 : i32
    return %c0_i32, %c0_i32_0 : i32, i32
  }
  func.func @transform_2(%arg0: i32, %arg1: i32) -> (i32, i32) {
    %c0_i32 = arith.constant 0 : i32
    %c0_i32_0 = arith.constant 0 : i32
    return %c0_i32, %arg0 : i32, i32
  }
  func.func @transform_3(%arg0: i32, %arg1: i32) -> (i32, i32) {
    %c0_i32 = arith.constant 0 : i32
    %c0_i32_0 = arith.constant 0 : i32
    return %c0_i32, %arg0 : i32, i32
  }
  func.func @transform_4(%arg0: i32, %arg1: i32) -> (i32, i32) {
    %c0_i32 = arith.constant 0 : i32
    return %arg1, %arg0 : i32, i32
  }
}

</mosaic_0001>

<bundles_post_ra>
// kernel: tpu_custom_call.1
= control target key start
LH: loop header
LB: loop body
LE: loop exit
PB: predicated region body
PF: predicated region fallthrough
CT: control target
= control target key end

     0   :  { %9 = vsyncpa [#allocation3], 0  ;;  %s1235_s0 = inlined_call_operand.hbm [shape: bf16[16,256], index: 0, kind: input, shape index: {}]   ;;  %s1236_s1 = inlined_call_operand.hbm [shape: bf16[1,256], index: 1, kind: input, shape index: {}]   ;;  %s1237_s2 = inlined_call_operand.hbm [shape: bf16[256,512], index: 2, kind: input, shape index: {}]   ;;  %s1238_s3 = inlined_call_operand.hbm [shape: bf16[1,512], index: 3, kind: input, shape index: {}]   ;;  %s1239_s4 = inlined_call_operand.hbm [shape: bf16[16,512], index: 4, kind: output, shape index: {}]  }
   0x1   :  { %10 = vsyncpa [#allocation6], 0 }
   0x2   :  { %11 = vsyncpa [#allocation9], 0  ;;  %s31_s17 = sshll.u32 %s1236_s1, 4  ;;  %s32_s17 = int_to_ptr.hbm [resolvable:$true] %s31_s17 }
   0x3   :  { %12 = vsyncpa [#allocation4], 0  ;;  %s1147_s18 = smov [#allocation5]   ;;  %s17_s22 = sshll.u32 %s1235_s0, 4  ;;  %s18_s22 = int_to_ptr.hbm [resolvable:$true] %s17_s22 }
   0x4   :  { %s33_s19 = sshll.u32 %s1147_s18, 4  ;;  %s1148_s23 = smov [#allocation2]   ;;  %s34_s19 = int_to_ptr.vmem [resolvable:$true] %s33_s19 }
   0x5   :  { %36 = dma.hbm_to_vmem [thread:$0]  %s32_s17, 32, %s34_s19, [#allocation6]  }
   0x6   :  { %s19_s24 = sshll.u32 %s1148_s23, 4  ;;  %s1149_s25 = smov 128   ;;  %s20_s24 = int_to_ptr.vmem [resolvable:$true] %s19_s24 }
   0x7   :  { %s1150_s26 = smov 8   ;;  %s41_s1 = sshll.u32 %s1237_s2, 4  ;;  %s42_s1 = int_to_ptr.hbm [resolvable:$true] %s41_s1 }
   0x8   :  { %25 = dma.hbm_to_vmem [thread:$0]  %s18_s22, 256, %s20_s24, [#allocation3], %s1149_s25, %s1149_s25, %s1150_s26  }
   0x9   :  { %s1151_s29 = smov [#allocation7]   ;;  %s55_s0 = sshll.u32 %s1238_s3, 4  ;;  %s56_s0 = int_to_ptr.hbm [resolvable:$true] %s55_s0 }
   0xa   :  { %s43_s30 = sshll.u32 %s1151_s29, 4  ;;  %s1152_s7 = smov 256   ;;  %s44_s30 = int_to_ptr.vmem [resolvable:$true] %s43_s30 }
   0xb   :  { %s1153_s8 = smov 16   ;;  %s1154_s9 = smov [#allocation8]  }
   0xc   :  { %49 = dma.hbm_to_vmem [thread:$0]  %s42_s1, 8192, %s44_s30, [#allocation6], %s1152_s7, %s1152_s7, %s1153_s8  }
   0xd   :  { %s57_s10 = sshll.u32 %s1154_s9, 4  ;;  %s58_s10 = int_to_ptr.vmem [resolvable:$true] %s57_s10 }
   0xe   :  { %60 = dma.hbm_to_vmem [thread:$0]  %s56_s0, 64, %s58_s10, [#allocation9]  }
   0xf   :  { %1139 = dma.done.wait [#allocation3], 256  }
  0x10   :  { %1140 = vsyncadd [#allocation3], 4294967040 }
  0x11   :  { %1141 = dma.done.wait [#allocation6], 8224  }
  0x12   :  { %1142 = vsyncadd [#allocation6], 4294959072 }
  0x13   :  { %1143 = dma.done.wait [#allocation9], 64  }
  0x14   :  { %1144 = vsyncadd [#allocation9], 4294967232  ;;  %v77_v0 = vld [vmem:[#allocation2] sm:$0xff]  ;;  %v78_v1 = vld [vmem:[#allocation2 + $0x8] sm:$0xff]  ;;  %v1155_v55 = vmov 256.0   ;;  %s1156_s2 = smov [#allocation10]  }
  0x15   :  { %v797_v2 = vld [vmem:[#allocation7 + $0xe0] sm:$0xf]  ;;  %v1197_v3 = vunpack.c.l.bf16 %v77_v0  ;;  %v1199_v4 = vunpack.c.h.bf16 %v77_v0  ;;  %v969_v5 = vld [vmem:[#allocation7 + $0xec] sm:$0xf0]  ;;  %v967_v10 = vld [vmem:[#allocation7 + $0xe4] sm:$0xf]  ;;  %v1205_v15 = vunpack.c.l.bf16 %v78_v1  ;;  %v1207_v16 = vunpack.c.h.bf16 %v78_v1 }
  0x16   :  { %v925_v6 = vld [vmem:[#allocation7 + $0x1e0] sm:$0xf]  ;;  %v1001_v7 = vld [vmem:[#allocation7 + $0x1ec] sm:$0xf0]  ;;  %v798_v8 = vor.u32 %v969_v5, %v797_v2  ;;  %v799_v11 = vld [vmem:[#allocation7 + $0xf0] sm:$0xf0]  ;;  %1013 = vrcp.f32 %v1155_v55 }
  0x17   :  { %v926_v9 = vor.u32 %v1001_v7, %v925_v6  ;;  %v999_v12 = vld [vmem:[#allocation7 + $0x1e4] sm:$0xf]  ;;  %v83_v13 = vmul.f32 %v1197_v3, %v1197_v3  ;;  %v84_v14 = vmul.f32 %v1199_v4, %v1199_v4  ;;  %v927_v17 = vld [vmem:[#allocation7 + $0x1f0] sm:$0xf0]  ;;  %v781_v18 = vld [vmem:[#allocation7 + $0xc0] sm:$0xf]  ;;  %v802_v20 = vor.u32 %v967_v10, %v799_v11 }
  0x18   :  { %v965_v19 = vld [vmem:[#allocation7 + $0xcc] sm:$0xf0]  ;;  %542 = vmatpush.bf16.msra.mxu0 %v798_v8  ;;  %v930_v21 = vor.u32 %v999_v12, %v927_v17  ;;  %v909_v23 = vld [vmem:[#allocation7 + $0x1c0] sm:$0xf]  ;;  %v963_v25 = vld [vmem:[#allocation7 + $0xc4] sm:$0xf]  ;;  %v85_v33 = vmul.f32 %v1205_v15, %v1205_v15  ;;  %v86_v34 = vmul.f32 %v1207_v16, %v1207_v16 }
  0x19   :  { %556 = vmatpush.bf16.msra.mxu1 %v926_v9  ;;  %v782_v22 = vor.u32 %v965_v19, %v781_v18  ;;  %v997_v24 = vld [vmem:[#allocation7 + $0x1cc] sm:$0xf0]  ;;  %v87_v26 = vadd.f32 %v84_v14, %v83_v13  ;;  %v783_v28 = vld [vmem:[#allocation7 + $0xd0] sm:$0xf0]  ;;  %v995_v29 = vld [vmem:[#allocation7 + $0x1c4] sm:$0xf]  ;;  %570 = vmatpush.bf16.msra.mxu2 %v802_v20 }
  0x1a   :  { %v910_v27 = vor.u32 %v997_v24, %v909_v23  ;;  %v911_v30 = vld [vmem:[#allocation7 + $0x1d0] sm:$0xf0]  ;;  %584 = vmatpush.bf16.msra.mxu3 %v930_v21  ;;  %v786_v31 = vor.u32 %v963_v25, %v783_v28  ;;  %v90_v35 = vadd.f32 %v86_v34, %v85_v33  ;;  %v765_v36 = vld [vmem:[#allocation7 + $0xa0] sm:$0xf]  ;;  %v961_v37 = vld [vmem:[#allocation7 + $0xac] sm:$0xf0] }
  0x1b   :  { %v914_v32 = vor.u32 %v995_v29, %v911_v30  ;;  %88 = vadd.xlane.f32.xlu0 %v87_v26  ;;  %v893_v38 = vld [vmem:[#allocation7 + $0x1a0] sm:$0xf]  ;;  %v766_v39 = vor.u32 %v961_v37, %v765_v36  ;;  %v993_v40 = vld [vmem:[#allocation7 + $0x1ac] sm:$0xf0]  ;;  %v959_v41 = vld [vmem:[#allocation7 + $0xa4] sm:$0xf] }
  0x1c   :  { %543 = vmatpush.bf16.msra.mxu0 %v782_v22  ;;  %v767_v42 = vld [vmem:[#allocation7 + $0xb0] sm:$0xf0]  ;;  %v894_v43 = vor.u32 %v993_v40, %v893_v38  ;;  %v991_v45 = vld [vmem:[#allocation7 + $0x1a4] sm:$0xf]  ;;  %v749_v48 = vld [vmem:[#allocation7 + $0x80] sm:$0xf]  ;;  %v1213_v11 = vpop.eup %1013 }
  0x1d   :  { %557 = vmatpush.bf16.msra.mxu1 %v910_v27  ;;  %571 = vmatpush.bf16.msra.mxu2 %v786_v31  ;;  %v770_v44 = vor.u32 %v959_v41, %v767_v42  ;;  %v895_v46 = vld [vmem:[#allocation7 + $0x1b0] sm:$0xf0]  ;;  %v957_v49 = vld [vmem:[#allocation7 + $0x8c] sm:$0xf0]  ;;  %v877_v50 = vld [vmem:[#allocation7 + $0x180] sm:$0xf]  ;;  %vm98_vm0 = vweird.f32 %v1213_v11 }
  0x1e   :  { %585 = vmatpush.bf16.msra.mxu3 %v914_v32  ;;  %v898_v47 = vor.u32 %v991_v45, %v895_v46  ;;  %v750_v51 = vor.u32 %v957_v49, %v749_v48  ;;  %v989_v52 = vld [vmem:[#allocation7 + $0x18c] sm:$0xf0]  ;;  %v955_v53 = vld [vmem:[#allocation7 + $0x84] sm:$0xf]  ;;  %v751_v54 = vld [vmem:[#allocation7 + $0x90] sm:$0xf0] }
  0x1f   :  { %v878_v56 = vor.u32 %v989_v52, %v877_v50  ;;  %v754_v57 = vor.u32 %v955_v53, %v751_v54  ;;  %v987_v58 = vld [vmem:[#allocation7 + $0x184] sm:$0xf]  ;;  %v879_v59 = vld [vmem:[#allocation7 + $0x190] sm:$0xf0]  ;;  %v733_v61 = vld [vmem:[#allocation7 + $0x60] sm:$0xf] }
  0x20   :  { %544 = vmatpush.bf16.msra.mxu0 %v766_v39  ;;  %v882_v60 = vor.u32 %v987_v58, %v879_v59  ;;  %v953_v62 = vld [vmem:[#allocation7 + $0x6c] sm:$0xf0]  ;;  %v861_v63 = vld [vmem:[#allocation7 + $0x160] sm:$0xf]  ;;  %v951_v2 = vld [vmem:[#allocation7 + $0x64] sm:$0xf] }
  0x21   :  { %558 = vmatpush.bf16.msra.mxu1 %v894_v43  ;;  %572 = vmatpush.bf16.msra.mxu2 %v770_v44  ;;  %v734_v0 = vor.u32 %v953_v62, %v733_v61  ;;  %v985_v1 = vld [vmem:[#allocation7 + $0x16c] sm:$0xf0]  ;;  %v735_v5 = vld [vmem:[#allocation7 + $0x70] sm:$0xf0]  ;;  %v983_v8 = vld [vmem:[#allocation7 + $0x164] sm:$0xf] }
  0x22   :  { %586 = vmatpush.bf16.msra.mxu3 %v898_v47  ;;  %v862_v6 = vor.u32 %v985_v1, %v861_v63  ;;  %v738_v7 = vor.u32 %v951_v2, %v735_v5  ;;  %v863_v9 = vld [vmem:[#allocation7 + $0x170] sm:$0xf0]  ;;  %v717_v12 = vld [vmem:[#allocation7 + $0x40] sm:$0xf]  ;;  %v949_v13 = vld [vmem:[#allocation7 + $0x4c] sm:$0xf0] }
  0x23   :  { %91 = vadd.xlane.f32.xlu0 %v90_v35  ;;  %v866_v10 = vor.u32 %v983_v8, %v863_v9  ;;  %v845_v14 = vld [vmem:[#allocation7 + $0x140] sm:$0xf]  ;;  %v718_v17 = vor.u32 %v949_v13, %v717_v12  ;;  %v981_v18 = vld [vmem:[#allocation7 + $0x14c] sm:$0xf0]  ;;  %v947_v19 = vld [vmem:[#allocation7 + $0x44] sm:$0xf] }
  0x24   :  { %545 = vmatpush.bf16.msra.mxu0 %v750_v51  ;;  %v719_v20 = vld [vmem:[#allocation7 + $0x50] sm:$0xf0]  ;;  %v846_v21 = vor.u32 %v981_v18, %v845_v14  ;;  %v979_v23 = vld [vmem:[#allocation7 + $0x144] sm:$0xf]  ;;  %v94_v25 = vmul.f32 256.0, %v1213_v11  ;;  %s666_s3 = sshll.u32 %s1156_s2, 4  ;;  %s667_s3 = int_to_ptr.vmem [resolvable:$true] %s666_s3 }
  0x25   :  { %559 = vmatpush.bf16.msra.mxu1 %v878_v56  ;;  %573 = vmatpush.bf16.msra.mxu2 %v754_v57  ;;  %v722_v22 = vor.u32 %v947_v19, %v719_v20  ;;  %v847_v24 = vld [vmem:[#allocation7 + $0x150] sm:$0xf0]  ;;  %v701_v27 = vld [vmem:[#allocation7 + $0x20] sm:$0xf]  ;;  %v945_v28 = vld [vmem:[#allocation7 + $0x2c] sm:$0xf0] }
  0x26   :  { %587 = vmatpush.bf16.msra.mxu3 %v882_v60  ;;  %v850_v26 = vor.u32 %v979_v23, %v847_v24  ;;  %v829_v29 = vld [vmem:[#allocation7 + $0x120] sm:$0xf]  ;;  %v702_v30 = vor.u32 %v945_v28, %v701_v27  ;;  %v977_v31 = vld [vmem:[#allocation7 + $0x12c] sm:$0xf0]  ;;  %v943_v32 = vld [vmem:[#allocation7 + $0x24] sm:$0xf] }
  0x27   :  { %v703_v33 = vld [vmem:[#allocation7 + $0x30] sm:$0xf0]  ;;  %v830_v34 = vor.u32 %v977_v31, %v829_v29  ;;  %v975_v36 = vld [vmem:[#allocation7 + $0x124] sm:$0xf]  ;;  %v95_v38 = vsub.f32 1.0, %v94_v25  ;;  %s668_s13 = sshll.u32 %s1239_s4, 4  ;;  %s669_s13 = int_to_ptr.hbm [resolvable:$true] %s668_s13 }
  0x28   :  { %546 = vmatpush.bf16.msra.mxu0 %v734_v0  ;;  %v706_v35 = vor.u32 %v943_v32, %v703_v33  ;;  %v831_v37 = vld [vmem:[#allocation7 + $0x130] sm:$0xf0]  ;;  %v685_v40 = vld [vmem:[#allocation7] sm:$0xf]  ;;  %v941_v41 = vld [vmem:[#allocation7 + $0xc] sm:$0xf0] }
  0x29   :  { %560 = vmatpush.bf16.msra.mxu1 %v862_v6  ;;  %574 = vmatpush.bf16.msra.mxu2 %v738_v7  ;;  %v834_v39 = vor.u32 %v975_v36, %v831_v37  ;;  %v813_v42 = vld [vmem:[#allocation7 + $0x100] sm:$0xf]  ;;  %v686_v43 = vor.u32 %v941_v41, %v685_v40  ;;  %v973_v44 = vld [vmem:[#allocation7 + $0x10c] sm:$0xf0]  ;;  %v939_v45 = vld [vmem:[#allocation7 + $0x4] sm:$0xf]  ;;  %v96_v56 = vmul.f32 %v1213_v11, %v95_v38 }
  0x2a   :  { %588 = vmatpush.bf16.msra.mxu3 %v866_v10  ;;  %v687_v46 = vld [vmem:[#allocation7 + $0x10] sm:$0xf0]  ;;  %v814_v47 = vor.u32 %v973_v44, %v813_v42  ;;  %v971_v49 = vld [vmem:[#allocation7 + $0x104] sm:$0xf]  ;;  %v805_v51 = vld [vmem:[#allocation7 + $0xe8] sm:$0xf] }
  0x2b   :  { %v690_v48 = vor.u32 %v939_v45, %v687_v46  ;;  %v815_v50 = vld [vmem:[#allocation7 + $0x110] sm:$0xf0]  ;;  %v970_v53 = vld [vmem:[#allocation7 + $0xf4] sm:$0xf0]  ;;  %v933_v54 = vld [vmem:[#allocation7 + $0x1e8] sm:$0xf]  ;;  %v97_v14 = vadd.f32 %v1213_v11, %v96_v56 }
  0x2c   :  { %547 = vmatpush.bf16.msra.mxu0 %v718_v17  ;;  %v818_v52 = vor.u32 %v971_v49, %v815_v50  ;;  %v1002_v55 = vld [vmem:[#allocation7 + $0x1f4] sm:$0xf0]  ;;  %v806_v57 = vor.u32 %v970_v53, %v805_v51  ;;  %v968_v59 = vld [vmem:[#allocation7 + $0xec] sm:$0xf]  ;;  %v807_v60 = vld [vmem:[#allocation7 + $0xf8] sm:$0xf0] }
  0x2d   :  { %561 = vmatpush.bf16.msra.mxu1 %v846_v21  ;;  %575 = vmatpush.bf16.msra.mxu2 %v722_v22  ;;  %v934_v58 = vor.u32 %v1002_v55, %v933_v54  ;;  %v1000_v61 = vld [vmem:[#allocation7 + $0x1ec] sm:$0xf]  ;;  %v810_v62 = vor.u32 %v968_v59, %v807_v60  ;;  %v935_v63 = vld [vmem:[#allocation7 + $0x1f8] sm:$0xf0]  ;;  %v789_v0 = vld [vmem:[#allocation7 + $0xc8] sm:$0xf] }
  0x2e   :  { %589 = vmatpush.bf16.msra.mxu3 %v850_v26  ;;  %v966_v1 = vld [vmem:[#allocation7 + $0xd4] sm:$0xf0]  ;;  %v938_v2 = vor.u32 %v1000_v61, %v935_v63  ;;  %v917_v6 = vld [vmem:[#allocation7 + $0x1c8] sm:$0xf]  ;;  %v964_v8 = vld [vmem:[#allocation7 + $0xcc] sm:$0xf] }
  0x2f   :  { %v790_v5 = vor.u32 %v966_v1, %v789_v0  ;;  %v998_v7 = vld [vmem:[#allocation7 + $0x1d4] sm:$0xf0]  ;;  %v791_v10 = vld [vmem:[#allocation7 + $0xd8] sm:$0xf0]  ;;  %v996_v12 = vld [vmem:[#allocation7 + $0x1cc] sm:$0xf] }
  0x30   :  { %548 = vmatpush.bf16.msra.mxu0 %v702_v30  ;;  %v918_v9 = vor.u32 %v998_v7, %v917_v6  ;;  %v919_v13 = vld [vmem:[#allocation7 + $0x1d8] sm:$0xf0]  ;;  %v794_v17 = vor.u32 %v964_v8, %v791_v10  ;;  %v773_v19 = vld [vmem:[#allocation7 + $0xa8] sm:$0xf]  ;;  %v962_v20 = vld [vmem:[#allocation7 + $0xb4] sm:$0xf0]  ;;  %v99_v30 = vsel %vm98_vm0, %v1213_v11, %v97_v14 }
  0x31   :  { %562 = vmatpush.bf16.msra.mxu1 %v830_v34  ;;  %576 = vmatpush.bf16.msra.mxu2 %v706_v35  ;;  %v922_v18 = vor.u32 %v996_v12, %v919_v13  ;;  %v901_v21 = vld [vmem:[#allocation7 + $0x1a8] sm:$0xf]  ;;  %v774_v22 = vor.u32 %v962_v20, %v773_v19  ;;  %v994_v23 = vld [vmem:[#allocation7 + $0x1b4] sm:$0xf0]  ;;  %v960_v24 = vld [vmem:[#allocation7 + $0xac] sm:$0xf] }
  0x32   :  { %590 = vmatpush.bf16.msra.mxu3 %v834_v39  ;;  %v775_v25 = vld [vmem:[#allocation7 + $0xb8] sm:$0xf0]  ;;  %v902_v26 = vor.u32 %v994_v23, %v901_v21  ;;  %v992_v28 = vld [vmem:[#allocation7 + $0x1ac] sm:$0xf]  ;;  %v757_v32 = vld [vmem:[#allocation7 + $0x88] sm:$0xf] }
  0x33   :  { %v778_v27 = vor.u32 %v960_v24, %v775_v25  ;;  %v903_v29 = vld [vmem:[#allocation7 + $0x1b8] sm:$0xf0]  ;;  %v958_v33 = vld [vmem:[#allocation7 + $0x94] sm:$0xf0]  ;;  %v885_v34 = vld [vmem:[#allocation7 + $0x188] sm:$0xf] }
  0x34   :  { %549 = vmatpush.bf16.msra.mxu0 %v686_v43  ;;  %v906_v31 = vor.u32 %v992_v28, %v903_v29  ;;  %v758_v36 = vor.u32 %v958_v33, %v757_v32  ;;  %v990_v37 = vld [vmem:[#allocation7 + $0x194] sm:$0xf0]  ;;  %v956_v38 = vld [vmem:[#allocation7 + $0x8c] sm:$0xf]  ;;  %v759_v39 = vld [vmem:[#allocation7 + $0x98] sm:$0xf0] }
  0x35   :  { %563 = vmatpush.bf16.msra.mxu1 %v814_v47  ;;  %577 = vmatpush.bf16.msra.mxu2 %v690_v48  ;;  %v886_v41 = vor.u32 %v990_v37, %v885_v34  ;;  %v762_v42 = vor.u32 %v956_v38, %v759_v39  ;;  %v988_v43 = vld [vmem:[#allocation7 + $0x18c] sm:$0xf]  ;;  %v887_v44 = vld [vmem:[#allocation7 + $0x198] sm:$0xf0]  ;;  %v741_v46 = vld [vmem:[#allocation7 + $0x68] sm:$0xf] }
  0x36   :  { %591 = vmatpush.bf16.msra.mxu3 %v818_v52  ;;  %v890_v11 = vor.u32 %v988_v43, %v887_v44  ;;  %v954_v47 = vld [vmem:[#allocation7 + $0x74] sm:$0xf0]  ;;  %v869_v48 = vld [vmem:[#allocation7 + $0x168] sm:$0xf]  ;;  %v952_v51 = vld [vmem:[#allocation7 + $0x6c] sm:$0xf] }
  0x37   :  { %v742_v49 = vor.u32 %v954_v47, %v741_v46  ;;  %v986_v50 = vld [vmem:[#allocation7 + $0x174] sm:$0xf0]  ;;  %v743_v52 = vld [vmem:[#allocation7 + $0x78] sm:$0xf0]  ;;  %v984_v55 = vld [vmem:[#allocation7 + $0x16c] sm:$0xf] }
  0x38   :  { %598 = vmatpush.bf16.msrb.mxu0 %v806_v57  ;;  %v870_v53 = vor.u32 %v986_v50, %v869_v48  ;;  %v746_v54 = vor.u32 %v952_v51, %v743_v52  ;;  %v871_v56 = vld [vmem:[#allocation7 + $0x178] sm:$0xf0]  ;;  %v725_v57 = vld [vmem:[#allocation7 + $0x48] sm:$0xf]  ;;  %v950_v59 = vld [vmem:[#allocation7 + $0x54] sm:$0xf0] }
  0x39   :  { %612 = vmatpush.bf16.msrb.mxu1 %v934_v58  ;;  %626 = vmatpush.bf16.msrb.mxu2 %v810_v62  ;;  %v874_v58 = vor.u32 %v984_v55, %v871_v56  ;;  %v853_v60 = vld [vmem:[#allocation7 + $0x148] sm:$0xf]  ;;  %v982_v61 = vld [vmem:[#allocation7 + $0x154] sm:$0xf0]  ;;  %v726_v63 = vor.u32 %v950_v59, %v725_v57  ;;  %v948_v1 = vld [vmem:[#allocation7 + $0x4c] sm:$0xf] }
  0x3a   :  { %640 = vmatpush.bf16.msrb.mxu3 %v938_v2  ;;  %v854_v0 = vor.u32 %v982_v61, %v853_v60  ;;  %v727_v2 = vld [vmem:[#allocation7 + $0x58] sm:$0xf0]  ;;  %v946_v10 = vld [vmem:[#allocation7 + $0x34] sm:$0xf0]  ;;  %v837_v13 = vld [vmem:[#allocation7 + $0x128] sm:$0xf] }
  0x3b   :  { %v730_v7 = vor.u32 %v948_v1, %v727_v2  ;;  %v855_v8 = vld [vmem:[#allocation7 + $0x158] sm:$0xf0]  ;;  %v978_v14 = vld [vmem:[#allocation7 + $0x134] sm:$0xf0]  ;;  %v976_v21 = vld [vmem:[#allocation7 + $0x12c] sm:$0xf] }
  0x3c   :  { %599 = vmatpush.bf16.msrb.mxu0 %v790_v5  ;;  %v980_v5 = vld [vmem:[#allocation7 + $0x14c] sm:$0xf]  ;;  %v711_v20 = vld [vmem:[#allocation7 + $0x38] sm:$0xf0]  ;;  %v838_v24 = vor.u32 %v978_v14, %v837_v13  ;;  %v942_v28 = vld [vmem:[#allocation7 + $0x14] sm:$0xf0] }
  0x3d   :  { %613 = vmatpush.bf16.msrb.mxu1 %v918_v9  ;;  %627 = vmatpush.bf16.msrb.mxu2 %v794_v17  ;;  %v709_v9 = vld [vmem:[#allocation7 + $0x28] sm:$0xf]  ;;  %v858_v12 = vor.u32 %v980_v5, %v855_v8  ;;  %v944_v17 = vld [vmem:[#allocation7 + $0x2c] sm:$0xf]  ;;  %v839_v25 = vld [vmem:[#allocation7 + $0x138] sm:$0xf0] }
  0x3e   :  { %641 = vmatpush.bf16.msrb.mxu3 %v922_v18  ;;  %v710_v23 = vor.u32 %v946_v10, %v709_v9  ;;  %v821_v29 = vld [vmem:[#allocation7 + $0x108] sm:$0xf]  ;;  %v842_v32 = vor.u32 %v976_v21, %v839_v25  ;;  %v940_v33 = vld [vmem:[#allocation7 + $0xc] sm:$0xf]  ;;  %v695_v34 = vld [vmem:[#allocation7 + $0x18] sm:$0xf0] }
  0x40   :  { %600 = vmatpush.bf16.msrb.mxu0 %v774_v22 }
  0x41   :  { %614 = vmatpush.bf16.msrb.mxu1 %v902_v26  ;;  %628 = vmatpush.bf16.msrb.mxu2 %v778_v27  ;;  %v693_v26 = vld [vmem:[#allocation7 + $0x8] sm:$0xf]  ;;  %v714_v27 = vor.u32 %v944_v17, %v711_v20 }
  0x42   :  { %642 = vmatpush.bf16.msrb.mxu3 %v906_v31  ;;  %v694_v38 = vor.u32 %v942_v28, %v693_v26 }
  0x44   :  { %601 = vmatpush.bf16.msrb.mxu0 %v758_v36  ;;  %v823_v36 = vld [vmem:[#allocation7 + $0x118] sm:$0xf0] }
  0x45   :  { %615 = vmatpush.bf16.msrb.mxu1 %v886_v41  ;;  %629 = vmatpush.bf16.msrb.mxu2 %v762_v42  ;;  %v128_v42 = vld [vmem:[#allocation5] sm:$0x3] }
  0x46   :  { %643 = vmatpush.bf16.msrb.mxu3 %v890_v11  ;;  %v129_v46 = vunpack.c.l.bf16 %v128_v42 }
  0x48   :  { %602 = vmatpush.bf16.msrb.mxu0 %v742_v49  ;;  %v131_v50 = vperm.slane %v129_v46, 0  ;;  %v132_v51 = vperm.slane %v129_v46, 2 }
  0x49   :  { %616 = vmatpush.bf16.msrb.mxu1 %v870_v53  ;;  %630 = vmatpush.bf16.msrb.mxu2 %v746_v54 }
  0x4a   :  { %644 = vmatpush.bf16.msrb.mxu3 %v874_v58  ;;  %v135_v57 = vperm.slane %v131_v50, 0  ;;  %v136_v58 = vperm.slane %v132_v51, 0 }
  0x4c   :  { %603 = vmatpush.bf16.msrb.mxu0 %v726_v63 }
  0x4d   :  { %617 = vmatpush.bf16.msrb.mxu1 %v854_v0  ;;  %631 = vmatpush.bf16.msrb.mxu2 %v730_v7 }
  0x4e   :  { %645 = vmatpush.bf16.msrb.mxu3 %v858_v12 }
  0x50   :  { %604 = vmatpush.bf16.msrb.mxu0 %v710_v23 }
  0x51   :  { %618 = vmatpush.bf16.msrb.mxu1 %v838_v24  ;;  %632 = vmatpush.bf16.msrb.mxu2 %v714_v27 }
  0x52   :  { %646 = vmatpush.bf16.msrb.mxu3 %v842_v32 }
  0x54   :  { %605 = vmatpush.bf16.msrb.mxu0 %v694_v38 }
  0x8e   :  { %v89_v35 = vpop.xlane.xlu0 %88 }
  0x8f   :  { %v100_v40 = vmul.f32 %v99_v30, %v89_v35  ;;  %v972_v35 = vld [vmem:[#allocation7 + $0x10c] sm:$0xf] }
  0x90   :  { %v826_v43 = vor.u32 %v972_v35, %v823_v36 }
  0x91   :  { %v1220_v45 = vadd.f32 1e-06, %v100_v40  ;;  %v698_v40 = vor.u32 %v940_v33, %v695_v34 }
  0x92   :  { %647 = vmatpush.bf16.msrb.mxu3 %v826_v43 }
  0x93   :  { %1015 = vrsqrt.f32 %v1220_v45  ;;  %633 = vmatpush.bf16.msrb.mxu2 %v698_v40  ;;  %vm110_vm2 = vweird.f32 %v1220_v45 }
  0x96   :  { %v92_v62 = vpop.xlane.xlu0 %91 }
  0x97   :  { %v101_v6 = vmul.f32 %v99_v30, %v92_v62  ;;  %v974_v30 = vld [vmem:[#allocation7 + $0x114] sm:$0xf0] }
  0x98   :  { %v822_v39 = vor.u32 %v974_v30, %v821_v29 }
  0x99   :  { %v1016_v18 = vpop.eup %1015  ;;  %v103_v19 = vadd.f32 1e-06, %v101_v6 }
  0x9a   :  { %v105_v22 = vmul.f32 %v1016_v18, %v1220_v45  ;;  %619 = vmatpush.bf16.msrb.mxu1 %v822_v39  ;;  %vm111_vm1 = vweird.f32 %v1016_v18 }
  0x9b   :  { %1017 = vrsqrt.f32 %v103_v19  ;;  %vm112_vm3 = vmor %vm110_vm2, %vm111_vm1  ;;  %vm120_vm5 = vweird.f32 %v103_v19 }
  0x9c   :  { %v106_v31 = vmul.f32 %v1016_v18, %v105_v22 }
  0x9e   :  { %v107_v37 = vmul.f32 0.5, %v106_v31 }
  0xa0   :  { %v108_v41 = vsub.f32 1.5, %v107_v37 }
  0xa1   :  { %v1018_v44 = vpop.eup %1017 }
  0xa2   :  { %v115_v11 = vmul.f32 %v1018_v44, %v103_v19  ;;  %v109_v47 = vmul.f32 %v1016_v18, %v108_v41  ;;  %vm121_vm4 = vweird.f32 %v1018_v44 }
  0xa3   :  { %vm122_vm6 = vmor %vm120_vm5, %vm121_vm4 }
  0xa4   :  { %v116_v48 = vmul.f32 %v1018_v44, %v115_v11  ;;  %v113_v52 = vsel %vm112_vm3, %v1016_v18, %v109_v47 }
  0xa5   :  { %v124_v55 = vmul.f32 %v113_v52, %v1197_v3  ;;  %v125_v56 = vmul.f32 %v113_v52, %v1199_v4  ;;  %v207_v3 = vld [vmem:[#allocation8] sm:$0xf] }
  0xa6   :  { %v117_v49 = vmul.f32 0.5, %v116_v48  ;;  %v208_v4 = vunpack.c.l.bf16 %v207_v3 }
  0xa7   :  { %v137_v61 = vmul.f32 %v135_v57, %v124_v55  ;;  %v138_v63 = vmul.f32 %v136_v58, %v125_v56 }
  0xa8   :  { %v118_v53 = vsub.f32 1.5, %v117_v49  ;;  %v210_v5 = vperm.slane %v208_v4, 0  ;;  %v211_v6 = vperm.slane %v208_v4, 2  ;;  %v212_v22 = vperm.slane %v208_v4, 4 }
  0xa9   :  { %v213_v26 = vperm.slane %v208_v4, 6 }
  0xaa   :  { %v119_v54 = vmul.f32 %v1018_v44, %v118_v53  ;;  %v219_v8 = vperm.slane %v211_v6, 0  ;;  %v220_v30 = vperm.slane %v212_v22, 0 }
  0xab   :  { %v221_v32 = vperm.slane %v213_v26, 0 }
  0xac   :  { %v123_v59 = vsel %vm122_vm6, %v1018_v44, %v119_v54 }
  0xad   :  { %v126_v60 = vmul.f32 %v123_v59, %v1205_v15  ;;  %v127_v45 = vmul.f32 %v123_v59, %v1207_v16  ;;  %v218_v16 = vperm.slane %v210_v5, 0 }
  0xaf   :  { %v139_v62 = vmul.f32 %v135_v57, %v126_v60  ;;  %v140_v0 = vmul.f32 %v136_v58, %v127_v45 }
  0xb1   :  { %v141_v1 = vpack.c.bf16 %v139_v62, %v137_v61  ;;  %v142_v2 = vpack.c.bf16 %v140_v0, %v138_v63 }
  0xb3   :  { %550 = vmatmul.bf16.vlgmr.msra.gmra.mxu0 %v141_v1  ;;  %564 = vmatmul.bf16.vlgmr.msra.gmra.mxu1 %v142_v2 }
  0xb4   :  { %578 = vmatmul.bf16.vlgmr.msra.gmra.mxu2 %v141_v1  ;;  %592 = vmatmul.bf16.vlgmr.msra.gmra.mxu3 %v142_v2 }
  0xc3   :  { %606 = vmatmul.bf16.vlgmr.msrb.gmra.mxu0 %v141_v1  ;;  %620 = vmatmul.bf16.vlgmr.msrb.gmra.mxu1 %v142_v2 }
  0xc4   :  { %634 = vmatmul.bf16.vlgmr.msrb.gmra.mxu2 %v141_v1  ;;  %648 = vmatmul.bf16.vlgmr.msrb.gmra.mxu3 %v142_v2 }
 0x130   :  { %v551_v15 = vpop.f32.mrf.mxu0  ;;  %v565_v7 = vpop.f32.mrf.mxu1 }
 0x131   :  { %v552_v9 = vadd.f32 %v551_v15, %v218_v16 }
 0x133   :  { %v566_v17 = vadd.f32 %v565_v7, %v552_v9 }
 0x137   :  { %v579_v10 = vpop.f32.mrf.mxu2  ;;  %v593_v12 = vpop.f32.mrf.mxu3 }
 0x138   :  { %v580_v13 = vadd.f32 %v579_v10, %v219_v8  ;;  %v553_v14 = vpop.f32.mrf.mxu0  ;;  %v567_v20 = vpop.f32.mrf.mxu1 }
 0x139   :  { %v554_v21 = vadd.f32 %v553_v14, %v218_v16 }
 0x13a   :  { %v594_v18 = vadd.f32 %v593_v12, %v580_v13 }
 0x13b   :  { %v568_v28 = vadd.f32 %v567_v20, %v554_v21 }
 0x13c   :  { %v654_v19 = vpack.c.bf16 %v594_v18, %v566_v17 }
 0x13e   :  { %658 = vst [vmem:[#allocation10] sm:$0xff] %v654_v19 }
 0x13f   :  { %v581_v23 = vpop.f32.mrf.mxu2  ;;  %v595_v24 = vpop.f32.mrf.mxu3 }
 0x140   :  { %v582_v25 = vadd.f32 %v581_v23, %v219_v8  ;;  %v607_v27 = vpop.f32.mrf.mxu0  ;;  %v621_v34 = vpop.f32.mrf.mxu1 }
 0x141   :  { %v608_v33 = vadd.f32 %v607_v27, %v220_v30 }
 0x142   :  { %v596_v29 = vadd.f32 %v595_v24, %v582_v25 }
 0x143   :  { %v622_v38 = vadd.f32 %v621_v34, %v608_v33 }
 0x144   :  { %v656_v31 = vpack.c.bf16 %v596_v29, %v568_v28 }
 0x146   :  { %660 = vst [vmem:[#allocation10 + $0x10] sm:$0xff] %v656_v31 }
 0x147   :  { %v635_v35 = vpop.f32.mrf.mxu2  ;;  %v649_v36 = vpop.f32.mrf.mxu3 }
 0x148   :  { %v636_v37 = vadd.f32 %v635_v35, %v221_v32  ;;  %v609_v40 = vpop.f32.mrf.mxu0  ;;  %v623_v11 = vpop.f32.mrf.mxu1 }
 0x149   :  { %v610_v42 = vadd.f32 %v609_v40, %v220_v30 }
 0x14a   :  { %v650_v39 = vadd.f32 %v649_v36, %v636_v37 }
 0x14b   :  { %v624_v47 = vadd.f32 %v623_v11, %v610_v42 }
 0x14c   :  { %v655_v41 = vpack.c.bf16 %v650_v39, %v622_v38 }
 0x14e   :  { %659 = vst [vmem:[#allocation10 + $0x8] sm:$0xff] %v655_v41 }
 0x14f   :  { %v637_v43 = vpop.f32.mrf.mxu2  ;;  %v651_v46 = vpop.f32.mrf.mxu3 }
 0x150   :  { %v638_v44 = vadd.f32 %v637_v43, %v221_v32 }
 0x152   :  { %v652_v48 = vadd.f32 %v651_v46, %v638_v44 }
 0x154   :  { %v657_v49 = vpack.c.bf16 %v652_v48, %v624_v47 }
 0x156   :  { %661 = vst [vmem:[#allocation10 + $0x18] sm:$0xff] %v657_v49 }
 0x157   :  { %674 = dma.vmem_to_hbm [thread:$0]  %s667_s3, 512, %s669_s13, [#allocation4], %s1152_s7, %s1152_s7, %s1153_s8  }
 0x158   :  { %1145 = dma.done.wait [#allocation4], 512  }
 0x159   :  { %1146 = vsyncadd [#allocation4], 4294966784 }
 0x15a   :  { %679 = vsyncpa [#allocation3], 1 }
 0x15b   :  { %680 = vsyncpa [#allocation6], 1 }
 0x15c   :  { %681 = vsyncpa [#allocation9], 1 }
 0x15d   :  { %682 = vsyncpa [#allocation4], 1 }

</bundles_post_ra>
